<compile_context>
chip_gen: v6e
topology: v6e:2x2x1
jax: 0.10.0
libtpu: 0.0.40
codegen_flags: <defaults>
</compile_context>

<pallas_src>
import functools
import math

import jax
import jax.numpy as jnp
from jax import lax
from jax.experimental import pallas as pl
from jax.experimental.pallas import tpu as pltpu


# ---------------------------------------------------------------------------
# Kernel 1: fused QKV projection (one MXU pass with a 3H-wide N dimension).
# ---------------------------------------------------------------------------
def _qkv_proj_kernel(x_ref, w_ref, q_ref, k_ref, v_ref, *, inv_scale):
    x = x_ref[0]                                     # (ts, H)
    # nn.Linear: y = x @ W.T with W (out, in). Contract x's H with W's axis 1
    # directly (no transpose materialized).
    qkv = lax.dot_general(
        x, w_ref[...],
        dimension_numbers=(((1,), (1,)), ((), ())),
        preferred_element_type=jnp.float32)          # (ts, 3H)
    h = q_ref.shape[-1]
    # Fold the 1/sqrt(H) softmax scale into q (S*H multiply instead of S*S).
    q_ref[0] = (qkv[:, :h] * inv_scale).astype(q_ref.dtype)
    k_ref[0] = qkv[:, h:2 * h].astype(k_ref.dtype)
    v_ref[0] = qkv[:, 2 * h:].astype(v_ref.dtype)


# ---------------------------------------------------------------------------
# Kernel 2: flash-style attention with online softmax.
# ---------------------------------------------------------------------------
def _flash_attn_kernel(q_ref, k_ref, v_ref, o_ref, m_s, l_s, acc_s):
    ki = pl.program_id(2)

    @pl.when(ki == 0)
    def _():
        m_s[...] = jnp.full_like(m_s, -jnp.inf)
        l_s[...] = jnp.zeros_like(l_s)
        acc_s[...] = jnp.zeros_like(acc_s)

    q = q_ref[0]                                     # (tq, H), pre-scaled
    k = k_ref[0]                                     # (tk, H)
    # q @ k^T without materializing a transpose: contract last dims.
    s = lax.dot_general(
        q, k,
        dimension_numbers=(((1,), (1,)), ((), ())),
        preferred_element_type=jnp.float32)          # (tq, tk)

    m_prev = m_s[...]                                # (tq, 1)
    m_new = jnp.maximum(m_prev, jnp.max(s, axis=-1, keepdims=True))
    alpha = jnp.exp(m_prev - m_new)                  # rescale of old stats
    p = jnp.exp(s - m_new)                           # (tq, tk)

    l_s[...] = alpha * l_s[...] + jnp.sum(p, axis=-1, keepdims=True)
    acc_s[...] = alpha * acc_s[...] + jnp.dot(
        p.astype(v_ref.dtype), v_ref[0], preferred_element_type=jnp.float32)
    m_s[...] = m_new

    @pl.when(ki == pl.num_programs(2) - 1)
    def _():
        inv_l = pl.reciprocal(l_s[...], approx=True)  # EUP slot, ~free
        o_ref[0] = (acc_s[...] * inv_l).astype(o_ref.dtype)


# ---------------------------------------------------------------------------
# Wrapper
# ---------------------------------------------------------------------------
def _pick_block(dim, max_block):
    """Largest power-of-two (multiple of 8) tile <= max_block dividing dim."""
    if dim <= max_block:
        return dim
    blk = max_block
    while blk >= 8:
        if dim % blk == 0:
            return blk
        blk //= 2
    return dim  # fall back to the full (always legal) extent


def self_attention(x, wq, wk, wv, *, block_q=None, block_kv=None):
    """x: (B, S, H); wq/wk/wv: (H, H) in PyTorch nn.Linear (out, in) layout."""
    B, S, H = x.shape
    inv_scale = 1.0 / math.sqrt(H)

    # Fuse the three projection weights once in the wrapper; keep (out, in)
    # layout so no HBM-side transpose is ever done.
    w_qkv = jnp.concatenate([wq, wk, wv], axis=0).astype(x.dtype)   # (3H, H)

    # Generation-aware defaults: 256 fits v7x's 64 MiB VMEM comfortably.
    ts = _pick_block(S, 512)
    bq = block_q if block_q is not None else _pick_block(S, 256)
    bk = block_kv if block_kv is not None else _pick_block(S, 256)

    # Rough VMEM budget (double-buffered blocks + f32 scratch), clamped so it
    # never exceeds v7x's 64 MiB physical VMEM.
    itemsize = jnp.dtype(x.dtype).itemsize
    est_flash = 2 * (2 * bq * H + 2 * bk * H) * itemsize + (bq * (H + 2)) * 4
    est_proj = 2 * (4 * ts * H) * itemsize + 2 * (3 * H * H) * itemsize
    vmem_limit = int(min(max(4 * max(est_flash, est_proj), 32 * 2**20),
                         64 * 2**20))

    # ---- Kernel 1: fused QKV projection -----------------------------------
    q, k, v = pl.pallas_call(
        functools.partial(_qkv_proj_kernel, inv_scale=inv_scale),
        out_shape=(
            jax.ShapeDtypeStruct((B, S, H), x.dtype),
            jax.ShapeDtypeStruct((B, S, H), x.dtype),
            jax.ShapeDtypeStruct((B, S, H), x.dtype),
        ),
        grid_spec=pltpu.PrefetchScalarGridSpec(
            num_scalar_prefetch=0,
            grid=(B, S // ts),
            in_specs=[
                pl.BlockSpec((1, ts, H), lambda b, si: (b, si, 0)),
                pl.BlockSpec((3 * H, H), lambda b, si: (0, 0)),
            ],
            out_specs=[
                pl.BlockSpec((1, ts, H), lambda b, si: (b, si, 0)),
                pl.BlockSpec((1, ts, H), lambda b, si: (b, si, 0)),
                pl.BlockSpec((1, ts, H), lambda b, si: (b, si, 0)),
            ],
        ),
        compiler_params=pltpu.CompilerParams(
            dimension_semantics=("parallel", "parallel"),
            vmem_limit_bytes=vmem_limit,
        ),
    )(x, w_qkv)

    # ---- Kernel 2: flash attention -----------------------------------------
    out = pl.pallas_call(
        _flash_attn_kernel,
        out_shape=jax.ShapeDtypeStruct((B, S, H), x.dtype),
        grid_spec=pltpu.PrefetchScalarGridSpec(
            num_scalar_prefetch=0,
            grid=(B, S // bq, S // bk),
            in_specs=[
                pl.BlockSpec((1, bq, H), lambda b, qi, ki: (b, qi, 0)),
                pl.BlockSpec((1, bk, H), lambda b, qi, ki: (b, ki, 0)),
                pl.BlockSpec((1, bk, H), lambda b, qi, ki: (b, ki, 0)),
            ],
            out_specs=pl.BlockSpec((1, bq, H), lambda b, qi, ki: (b, qi, 0)),
            scratch_shapes=[
                pltpu.VMEM((bq, 1), jnp.float32),   # running max  m
                pltpu.VMEM((bq, 1), jnp.float32),   # running sum  l
                pltpu.VMEM((bq, H), jnp.float32),   # output accumulator
            ],
        ),
        compiler_params=pltpu.CompilerParams(
            dimension_semantics=("parallel", "parallel", "arbitrary"),
            vmem_limit_bytes=vmem_limit,
        ),
    )(q, k, v)

    return out


def self_attention_ref(x, wq, wk, wv):
    """Pure-JAX reference matching the PyTorch forward pass."""
    H = x.shape[-1]
    q = jnp.einsum("bsh,oh->bso", x, wq)
    k = jnp.einsum("bsh,oh->bso", x, wk)
    v = jnp.einsum("bsh,oh->bso", x, wv)
    s = jnp.einsum("bqh,bkh->bqk", q, k) / math.sqrt(H)
    p = jax.nn.softmax(s, axis=-1)
    return jnp.einsum("bqk,bkh->bqh", p, v)


if __name__ == "__main__":
    B, S, H = 2, 8, 32  # batch, seq_len, hidden_dim (matches the module)

    key = jax.random.PRNGKey(0)
    kx, kq, kk, kv = jax.random.split(key, 4)

    x = jax.random.normal(kx, (B, S, H), dtype=jnp.float32)
    # Deterministic init mimicking nn.Linear default (uniform in +-1/sqrt(H)).
    bound = 1.0 / math.sqrt(H)
    wq = jax.random.uniform(kq, (H, H), jnp.float32, -bound, bound)
    wk = jax.random.uniform(kk, (H, H), jnp.float32, -bound, bound)
    wv = jax.random.uniform(kv, (H, H), jnp.float32, -bound, bound)

    out = jax.block_until_ready(self_attention(x, wq, wk, wv))

    ref = self_attention_ref(x, wq, wk, wv)
    assert out.shape == (B, S, H)
    # Tolerance loosened slightly: pl.reciprocal(approx=True) (EUP vrcp) is
    # used for the softmax normalization.
    assert jnp.allclose(out, ref, atol=5e-3, rtol=5e-3), "mismatch vs reference"

    print("KERNEL_OK")
</pallas_src>

<mosaic_0001>
module attributes {stable_mosaic.version = 11 : i64} {
  func.func @_qkv_proj_kernel(%arg0: i32, %arg1: i32, %arg2: memref<1x8x32xf32, #tpu.memory_space<vmem>>, %arg3: memref<96x32xf32, #tpu.memory_space<vmem>>, %arg4: memref<1x8x32xf32, #tpu.memory_space<vmem>>, %arg5: memref<1x8x32xf32, #tpu.memory_space<vmem>>, %arg6: memref<1x8x32xf32, #tpu.memory_space<vmem>>) attributes {dimension_semantics = [#tpu.dimension_semantics<parallel>, #tpu.dimension_semantics<parallel>], iteration_bounds = array<i64: 2, 1>, scalar_prefetch = 0 : i64, scratch_operands = 0 : i64, tpu.core_type = #tpu.core_type<tc>, window_params = [{transform_indices = @transform_0, window_bounds = array<i64: 1, 8, 32>}, {pipeline_mode = #tpu.pipeline_mode<synchronous>, transform_indices = @transform_1, window_bounds = array<i64: 96, 32>}, {transform_indices = @transform_2, window_bounds = array<i64: 1, 8, 32>}, {transform_indices = @transform_3, window_bounds = array<i64: 1, 8, 32>}, {transform_indices = @transform_4, window_bounds = array<i64: 1, 8, 32>}]} {
    %c0 = arith.constant 0 : index
    %c0_0 = arith.constant 0 : index
    %c0_1 = arith.constant 0 : index
    %0 = vector.load %arg2[%c0, %c0_0, %c0_1] : memref<1x8x32xf32, #tpu.memory_space<vmem>>, vector<1x8x32xf32>
    %1 = vector.shape_cast %0 : vector<1x8x32xf32> to vector<8x32xf32>
    %c0_2 = arith.constant 0 : index
    %c0_3 = arith.constant 0 : index
    %2 = vector.load %arg3[%c0_2, %c0_3] : memref<96x32xf32, #tpu.memory_space<vmem>>, vector<96x32xf32>
    %cst = arith.constant dense<0.000000e+00> : vector<8x96xf32>
    %3 = tpu.matmul %1, %2, %cst {dimension_numbers = #tpu.dot_dimension_numbers<[1], [1], [0], [0], [0, 0, 1, 0], [], []>} : vector<8x32xf32>, vector<96x32xf32>, vector<8x96xf32> -> vector<8x96xf32>
    %4 = vector.extract_strided_slice %3 {offsets = [0, 0], sizes = [8, 32], strides = [1, 1]} : vector<8x96xf32> to vector<8x32xf32>
    %cst_4 = arith.constant 0.176776692 : f32
    %5 = vector.broadcast %cst_4 : f32 to vector<8x32xf32>
    %6 = arith.mulf %4, %5 : vector<8x32xf32>
    %c0_5 = arith.constant 0 : index
    %c0_6 = arith.constant 0 : index
    %c0_7 = arith.constant 0 : index
    %7 = vector.load %arg4[%c0_5, %c0_6, %c0_7] : memref<1x8x32xf32, #tpu.memory_space<vmem>>, vector<1x8x32xf32>
    %8 = vector.shape_cast %7 : vector<1x8x32xf32> to vector<8x32xf32>
    %9 = vector.shape_cast %6 : vector<8x32xf32> to vector<1x8x32xf32>
    tpu.vector_store %arg4[%c0_5, %c0_6, %c0_7], %9 {strides = array<i32>} : memref<1x8x32xf32, #tpu.memory_space<vmem>>, vector<1x8x32xf32>,
    %10 = vector.extract_strided_slice %3 {offsets = [0, 32], sizes = [8, 32], strides = [1, 1]} : vector<8x96xf32> to vector<8x32xf32>
    %c0_8 = arith.constant 0 : index
    %c0_9 = arith.constant 0 : index
    %c0_10 = arith.constant 0 : index
    %11 = vector.load %arg5[%c0_8, %c0_9, %c0_10] : memref<1x8x32xf32, #tpu.memory_space<vmem>>, vector<1x8x32xf32>
    %12 = vector.shape_cast %11 : vector<1x8x32xf32> to vector<8x32xf32>
    %13 = vector.shape_cast %10 : vector<8x32xf32> to vector<1x8x32xf32>
    tpu.vector_store %arg5[%c0_8, %c0_9, %c0_10], %13 {strides = array<i32>} : memref<1x8x32xf32, #tpu.memory_space<vmem>>, vector<1x8x32xf32>,
    %14 = vector.extract_strided_slice %3 {offsets = [0, 64], sizes = [8, 32], strides = [1, 1]} : vector<8x96xf32> to vector<8x32xf32>
    %c0_11 = arith.constant 0 : index
    %c0_12 = arith.constant 0 : index
    %c0_13 = arith.constant 0 : index
    %15 = vector.load %arg6[%c0_11, %c0_12, %c0_13] : memref<1x8x32xf32, #tpu.memory_space<vmem>>, vector<1x8x32xf32>
    %16 = vector.shape_cast %15 : vector<1x8x32xf32> to vector<8x32xf32>
    %17 = vector.shape_cast %14 : vector<8x32xf32> to vector<1x8x32xf32>
    tpu.vector_store %arg6[%c0_11, %c0_12, %c0_13], %17 {strides = array<i32>} : memref<1x8x32xf32, #tpu.memory_space<vmem>>, vector<1x8x32xf32>,
    return
  }
  func.func @transform_0(%arg0: i32, %arg1: i32) -> (i32, i32, i32) {
    %c0_i32 = arith.constant 0 : i32
    %c0_i32_0 = arith.constant 0 : i32
    return %arg0, %arg1, %c0_i32 : i32, i32, i32
  }
  func.func @transform_1(%arg0: i32, %arg1: i32) -> (i32, i32) {
    %c0_i32 = arith.constant 0 : i32
    %c0_i32_0 = arith.constant 0 : i32
    %c0_i32_1 = arith.constant 0 : i32
    return %c0_i32, %c0_i32_0 : i32, i32
  }
  func.func @transform_2(%arg0: i32, %arg1: i32) -> (i32, i32, i32) {
    %c0_i32 = arith.constant 0 : i32
    %c0_i32_0 = arith.constant 0 : i32
    return %arg0, %arg1, %c0_i32 : i32, i32, i32
  }
  func.func @transform_3(%arg0: i32, %arg1: i32) -> (i32, i32, i32) {
    %c0_i32 = arith.constant 0 : i32
    %c0_i32_0 = arith.constant 0 : i32
    return %arg0, %arg1, %c0_i32 : i32, i32, i32
  }
  func.func @transform_4(%arg0: i32, %arg1: i32) -> (i32, i32, i32) {
    %c0_i32 = arith.constant 0 : i32
    %c0_i32_0 = arith.constant 0 : i32
    return %arg0, %arg1, %c0_i32 : i32, i32, i32
  }
}

</mosaic_0001>

<bundles_post_ra>
// kernel: tpu_custom_call.1
= control target key start
LH: loop header
LB: loop body
LE: loop exit
PB: predicated region body
PF: predicated region fallthrough
CT: control target
= control target key end

     0   :  { %10 = vsyncpa [#allocation3], 0  ;;  %s1094_s0 = inlined_call_operand.vmem [shape: f32[2,8,32], index: 0, kind: input, shape index: {}]   ;;  %s1095_s1 = inlined_call_operand.vmem [shape: f32[96,32], index: 1, kind: input, shape index: {}]   ;;  %s1096_s2 = inlined_call_operand.hbm [shape: f32[2,8,32], index: 2, kind: output, shape index: {0}]   ;;  %s1097_s3 = inlined_call_operand.hbm [shape: f32[2,8,32], index: 3, kind: output, shape index: {1}]   ;;  %s1098_s4 = inlined_call_operand.hbm [shape: f32[2,8,32], index: 4, kind: output, shape index: {2}]  }
   0x1   :  { %12 = vsyncpa [#allocation3 + $0x1], 0 }
   0x2   :  { %13 = vsyncpa [#allocation5], 0 }
   0x3   :  { %15 = vsyncpa [#allocation5 + $0x1], 0  ;;  %s866_s15 = smov 0   ;;  %s868_s16 = smov 0  }
   0x4   :  { %s870_s17 = smov 0   ;;  %s872_s18 = smov 0  }
   0x5   :  { %s874_s19 = smov 0   ;;  %s876_s20 = smov 0  }
   0x6 LB: > { %s561_s21 = sadd.s32 4294967295, %s832_s20   ;;  %s1099_s22 = sadd.s32 4294967294, %s832_s20   ;;  %s832_s20 = sphi %s876_s20, %s21_s20   ;;  %s828_s19 = sphi %s874_s19, %s1107_s19   ;;  %s824_s18 = sphi %s872_s18, %s1106_s18   ;;  %s820_s17 = sphi %s870_s17, %s1105_s17   ;;  %s816_s16 = sphi %s868_s16, %s1104_s16   ;;  %s812_s15 = sphi %s866_s15, %s1103_s15  }
   0x7   : > { %s33_s23 = sadd.s32 1, %s828_s19  ;;  %s91_s24 = sadd.s32 1, %s820_s17 }
   0x8   : > { %p35_p0 = scmp.ge.s32.totalorder %s33_s23, 2  ;;  %p101_p1 = scmp.ne.s32.totalorder %s820_s17, %s816_s16 }
   0x9   : > { %p102_p2 = scmp.eq.s32.totalorder %s561_s21, 1  ;;  %p107_p3 = scmp.ne.s32.totalorder %s816_s16, %s812_s15 }
   0xa   : > { %s1109_s23 = smov (%p35_p0, %s33_s23), 0  ;;  %p108_p5 = scmp.eq.s32.totalorder %s1099_s22, 1 }
   0xb   : > { %p908_p4 = por %p102_p2, %p101_p1  ;;  %s86_s26 = ssub.s32 %s828_s19, %s1109_s23 }
   0xc   : > { %p565_p6 = scmp.ge.s32.totalorder %s832_s20, 1  ;;  %p89_p7 = scmp.eq.s32.totalorder %s86_s26, 0 }
   0xd   : > { %p917_p8 = por %p108_p5, %p107_p3  ;;  %p195_p9 = scmp.lt.s32.totalorder %s832_s20, 3 }
   0xe   : > { %s923_s28 = scalar_select %p89_p7, %s820_s17, %s91_s24  }
   0xf   : > { %p196_p10 = pnand %p565_p6, %p195_p9 }
  0x10   : > { %p233_p11 = scmp.lt.s32.totalorder (!%p196_p10), %s824_s18, 1  ;;  %s216_s30 = sand.u32 (!%p196_p10), 1, %s816_s16  }
  0x11   : > { %199 = sbr.rel (%p196_p10) target bundleno = 414 (0x19e), region = 28  ;;  %s980_s5 = sshll.u32 (!%p196_p10), %s216_s30, 3 }
  0x12   : > { %s983_s6 = sshll.u32 (!%p196_p10), %s824_s18, 7  ;;  %s218_s7 = scalar_lea.vmem (!%p196_p10), [#allocation2], %s980_s5 }
  0x13   : > { %s399_s8 = sshll.u32 (!%p196_p10), %s218_s7, 4  ;;  %s375_s13 = scalar_lea.sflag (!%p196_p10), [#allocation3], %s216_s30  ;;  %s400_s8 = int_to_ptr.vmem [resolvable:$true] %s399_s8 }
  0x14   : > { %s700_s14 = scalar_lea.vmem (!%p196_p10), %s400_s8, 128 }
  0x15   : > { %p701_p12 = scmp.ne.s32.totalorder (!%p196_p10), %s400_s8, %s700_s14 }
  0x16   : > { %v252_v0 = vld [vmem:[%s1095_s1 + $0x58] sm:$0xff]  ;;  %vm253_vm0 = vcmask 261120   ;;  %v834_v1 = vmov 0.0   ;;  %vm835_vm1 = vmmov 0   ;;  %v251_v2 = vld [vmem:[%s1095_s1 + $0x50] sm:$0xff]  ;;  %v250_v3 = vld [vmem:[%s1095_s1 + $0x48] sm:$0xff] }
  0x17   : > { %604 = vmatprep.subr.mxu0 %v834_v1  ;;  %628 = vmatprep.mubr.msk.f32.mxu0 %vm835_vm1, %v834_v1  ;;  %v249_v4 = vld [vmem:[%s1095_s1 + $0x40] sm:$0xff]  ;;  %v248_v5 = vld [vmem:[%s1095_s1 + $0x38] sm:$0xff]  ;;  %v247_v6 = vld [vmem:[%s1095_s1 + $0x30] sm:$0xff]  ;;  %s234_s9 = scalar_select %p233_p11, %s824_s18, 1 }
  0x18   : > { %605 = vmatpush3.xpose.msk.msra.mxu0 %vm253_vm0, %v252_v0  ;;  %v246_v7 = vld [vmem:[%s1095_s1 + $0x28] sm:$0xff]  ;;  %v245_v8 = vld [vmem:[%s1095_s1 + $0x20] sm:$0xff]  ;;  %v244_v9 = vld [vmem:[%s1095_s1 + $0x18] sm:$0xff]  ;;  %p702_p13 = pnand %p701_p12, %p908_p4  ;;  %s837_s18 = smov [#allocation2]  }
  0x19   : > { %606 = vmatprep.subr.mxu0 %v834_v1  ;;  %v243_v10 = vld [vmem:[%s1095_s1 + $0x10] sm:$0xff]  ;;  %v242_v11 = vld [vmem:[%s1095_s1 + $0x8] sm:$0xff]  ;;  %s569_s12 = sshll.u32 %s234_s9, 3  ;;  %v241_v12 = vld [vmem:[%s1095_s1] sm:$0xff]  ;;  %s836_s9 = smov 96  }
  0x1a   : > { %s239_s29 = scalar_lea.vmem %s1094_s0, %s569_s12  ;;  %s990_s12 = scalar_lea.hbm %s1096_s2, %s983_s6 }
  0x1b   : > { %v240_v13 = vld [vmem:[%s239_s29] sm:$0xff]  ;;  %p703_p0 = pneg %p702_p13  ;;  %s704_s24 = sshll.u32 %s837_s18, 4  ;;  %s705_s24 = int_to_ptr.vmem [resolvable:$false] %s704_s24 }
  0x1c   : > { %607 = vmatpush3.xpose.msk.msra.mxu0 %vm253_vm0, %v251_v2  ;;  %s706_s26 = scalar_lea.vmem %s705_s24, 256  ;;  %p707_p1 = scmp.lt.s32.totalorder %s400_s8, %s705_s24 }
  0x1d   : > { %608 = vmatprep.subr.mxu0 %v834_v1  ;;  %p708_p2 = scmp.lt.s32.totalorder %s706_s26, %s700_s14 }
  0x1f   : > { %p709_p3 = por %p708_p2, %p707_p1 }
  0x20   : > { %609 = vmatpush3.xpose.msk.msra.mxu0 %vm253_vm0, %v250_v3 }
  0x21   : > { %610 = vmatprep.subr.mxu0 %v834_v1  ;;  %p710_p5 = pnand %p709_p3, %p703_p0 }
  0x24   : > { %611 = vmatpush3.xpose.msk.msra.mxu0 %vm253_vm0, %v249_v4 }
  0x25   : > { %612 = vmatprep.subr.mxu0 %v834_v1 }
  0x28   : > { %613 = vmatpush3.xpose.msk.msra.mxu0 %vm253_vm0, %v248_v5 }
  0x29   : > { %614 = vmatprep.subr.mxu0 %v834_v1 }
  0x2c   : > { %615 = vmatpush3.xpose.msk.msra.mxu0 %vm253_vm0, %v247_v6 }
  0x2d   : > { %616 = vmatprep.subr.mxu0 %v834_v1 }
  0x30   : > { %617 = vmatpush3.xpose.msk.msra.mxu0 %vm253_vm0, %v246_v7 }
  0x31   : > { %618 = vmatprep.subr.mxu0 %v834_v1 }
  0x34   : > { %619 = vmatpush3.xpose.msk.msra.mxu0 %vm253_vm0, %v245_v8 }
  0x35   : > { %620 = vmatprep.subr.mxu0 %v834_v1 }
  0x38   : > { %621 = vmatpush3.xpose.msk.msra.mxu0 %vm253_vm0, %v244_v9 }
  0x39   : > { %622 = vmatprep.subr.mxu0 %v834_v1 }
  0x3c   : > { %623 = vmatpush3.xpose.msk.msra.mxu0 %vm253_vm0, %v243_v10 }
  0x3d   : > { %624 = vmatprep.subr.mxu0 %v834_v1 }
  0x40   : > { %625 = vmatpush3.xpose.msk.msra.mxu0 %vm253_vm0, %v242_v11 }
  0x41   : > { %626 = vmatprep.subr.mxu0 %v834_v1 }
  0x44   : > { %627 = vmatpush3.xpose.msk.msra.mxu0 %vm253_vm0, %v241_v12 }
  0x47   : > { %629 = vmatmul.mubr.msk.f32.vlgmr.msra.gmra.mxu0 %vm253_vm0, %v240_v13 }
 0x107   : > { %v359_v14 = vpop.f32.mrf.mxu0 }
 0x108   : > { %v363_v15 = vmul.f32 0.17677669, %v359_v14  ;;  %366 = vrot.lane.b32.xlu0 %v359_v14, %s836_s9 }
 0x109   : > { %v630_v16 = vpop.f32.mrf.mxu0 }
 0x10a   : > { %364 = vst.msk [vmem:[%s218_s7] sm:$0xff] %vm253_vm0, %v363_v15 }
 0x10b   : > { %713 = shalt.err (!%p710_p5)
}
 0x10c   : > { %s714_s29 = scalar_lea.hbm %s990_s12, 128  ;;  %s718_s9 = scalar_lea.hbm %s1096_s2, 256 }
 0x10d   : > { %p715_p6 = scmp.ne.s32.totalorder %s990_s12, %s714_s29  ;;  %p719_p10 = scmp.lt.s32.totalorder %s990_s12, %s1096_s2 }
 0x10e   : > { %p720_p11 = scmp.lt.s32.totalorder %s718_s9, %s714_s29 }
 0x10f   : > { %p716_p7 = pnand %p715_p6, %p908_p4 }
 0x110   : > { %p721_p12 = por %p720_p11, %p719_p10 }
 0x111   : > { %p717_p9 = pneg %p716_p7 }
 0x113   : > { %p722_p13 = pnand %p721_p12, %p717_p9 }
 0x115   : > { %725 = shalt.err (!%p722_p13)
}
 0x116   : > { %631 = dma.vmem_to_hbm [thread:$0]  (%p908_p4), %s400_s8, 128, %s990_s12, %s375_s13  }
 0x117   : > { %s838_s14 = smov 64   ;;  %s1011_s18 = sand.u32 1, %s561_s21  }
 0x118   : > { %370 = vrot.lane.b32.xlu0 %v359_v14, %s838_s14  ;;  %s225_s24 = scalar_lea.vmem [#allocation4], %s980_s5  ;;  %s1018_s7 = scalar_lea.hbm %s1097_s3, %s983_s6 }
 0x119   : > { %s413_s26 = sshll.u32 %s225_s24, 4  ;;  %s232_s8 = scalar_lea.vmem [#allocation6], %s980_s5  ;;  %s1020_s26 = int_to_ptr.vmem [resolvable:$true] %s413_s26 }
 0x11a   : > { %s427_s12 = sshll.u32 %s232_s8, 4  ;;  %s380_s21 = scalar_lea.sflag [#allocation5], %s1011_s18  ;;  %s428_s12 = int_to_ptr.vmem [resolvable:$true] %s427_s12 }
 0x11b   : > { %s726_s13 = scalar_lea.vmem %s1020_s26, 128  ;;  %s839_s9 = smov [#allocation4]  }
 0x11c   : > { %p727_p0 = scmp.ne.s32.totalorder %s1020_s26, %s726_s13  ;;  %s730_s10 = sshll.u32 %s839_s9, 4  ;;  %s731_s10 = int_to_ptr.vmem [resolvable:$false] %s730_s10 }
 0x11d   : > { %s732_s11 = scalar_lea.vmem %s731_s10, 256  ;;  %p733_p3 = scmp.lt.s32.totalorder %s1020_s26, %s731_s10 }
 0x11e   : > { %p728_p1 = pnand %p727_p0, %p908_p4  ;;  %p734_p5 = scmp.lt.s32.totalorder %s732_s11, %s726_s13 }
 0x120   : > { %p729_p2 = pneg %p728_p1  ;;  %p735_p6 = por %p734_p5, %p733_p3 }
 0x122   : > { %p736_p7 = pnand %p735_p6, %p729_p2 }
 0x17a   : > { %v367_v17 = vpop.permute.xlu0 %366 }
 0x17b   : > { %369 = vst.msk [vmem:[%s225_s24] sm:$0xff] %vm253_vm0, %v367_v17 }
 0x17c   : > { %739 = shalt.err (!%p736_p7)
}
 0x17d   : > { %s740_s14 = scalar_lea.hbm %s1018_s7, 128  ;;  %s744_s30 = scalar_lea.hbm %s1097_s3, 256 }
 0x17e   : > { %p741_p9 = scmp.ne.s32.totalorder %s1018_s7, %s740_s14  ;;  %p745_p12 = scmp.lt.s32.totalorder %s1018_s7, %s1097_s3 }
 0x17f   : > { %p746_p13 = scmp.lt.s32.totalorder %s744_s30, %s740_s14 }
 0x180   : > { %p742_p10 = pnand %p741_p9, %p908_p4 }
 0x181   : > { %p747_p0 = por %p746_p13, %p745_p12 }
 0x182   : > { %p743_p11 = pneg %p742_p10 }
 0x184   : > { %p748_p1 = pnand %p747_p0, %p743_p11 }
 0x186   : > { %751 = shalt.err (!%p748_p1)
}
 0x187   : > { %632 = dma.vmem_to_hbm [thread:$0]  (%p908_p4), %s1020_s26, 128, %s1018_s7, %s380_s21  }
 0x188   : > { %s425_s22 = scalar_lea.hbm %s1098_s4, %s983_s6  ;;  %s752_s11 = scalar_lea.vmem %s428_s12, 128 }
 0x189   : > { %p753_p2 = scmp.ne.s32.totalorder %s428_s12, %s752_s11  ;;  %s840_s14 = smov [#allocation6]  }
 0x18a   : > { %v371_v18 = vpop.permute.xlu0 %370  ;;  %s756_s24 = sshll.u32 %s840_s14, 4  ;;  %s757_s24 = int_to_ptr.vmem [resolvable:$false] %s756_s24 }
 0x18b   : > { %373 = vst.msk [vmem:[%s232_s8] sm:$0xff] %vm253_vm0, %v371_v18  ;;  %p754_p3 = pnand %p753_p2, %p908_p4  ;;  %s758_s29 = scalar_lea.vmem %s757_s24, 256 }
 0x18c   : > { %p759_p6 = scmp.lt.s32.totalorder %s428_s12, %s757_s24  ;;  %p760_p7 = scmp.lt.s32.totalorder %s758_s29, %s752_s11 }
 0x18d   : > { %p755_p5 = pneg %p754_p3 }
 0x18e   : > { %p761_p9 = por %p760_p7, %p759_p6 }
 0x190   : > { %p762_p10 = pnand %p761_p9, %p755_p5 }
 0x192   : > { %765 = shalt.err (!%p762_p10)
}
 0x193   : > { %s766_s26 = scalar_lea.hbm %s425_s22, 128  ;;  %s770_s7 = scalar_lea.hbm %s1098_s4, 256 }
 0x194   : > { %p767_p11 = scmp.ne.s32.totalorder %s425_s22, %s766_s26  ;;  %p771_p0 = scmp.lt.s32.totalorder %s425_s22, %s1098_s4 }
 0x195   : > { %p772_p1 = scmp.lt.s32.totalorder %s770_s7, %s766_s26 }
 0x196   : > { %p768_p12 = pnand %p767_p11, %p908_p4 }
 0x197   : > { %p773_p2 = por %p772_p1, %p771_p0 }
 0x198   : > { %p769_p13 = pneg %p768_p12 }
 0x19a   : > { %p774_p3 = pnand %p773_p2, %p769_p13 }
 0x19c   : > { %777 = shalt.err (!%p774_p3)
}
 0x19d   : > { %633 = dma.vmem_to_hbm [thread:$0]  (%p908_p4), %s428_s12, 128, %s425_s22, %s380_s21  }
 0x19e PF: > { %p647_p5 = scmp.ge.s32.totalorder %s832_s20, 2  ;;  %s439_s9 = sand.u32 1, %s812_s15  }
 0x19f   : > { %s440_s13 = scalar_lea.sflag [#allocation3], %s439_s9 }
 0x1a0   : > { %p638_p6 = pnand %p647_p5, %p917_p8 }
 0x1a2   : > { %p639_p7 = pneg %p638_p6 }
 0x1a4   : > { %803 = dma.done.wait (%p639_p7), %s440_s13, 128  }
 0x1a5   : > { %805 = vsyncadd (%p639_p7), %s440_s13, 4294967168  ;;  %s1102_s10 = sadd.s32 4294967294, %s832_s20  }
 0x1a6   : > { %s448_s11 = sand.u32 1, %s1102_s10  }
 0x1a7   : > { %s449_s14 = scalar_lea.sflag [#allocation5], %s448_s11 }
 0x1a8   : > { %807 = dma.done.wait (%p639_p7), %s449_s14, 256  }
 0x1a9   : > { %809 = vsyncadd (%p639_p7), %s449_s14, 4294967040  ;;  %s21_s20 = sadd.s32 1, %s832_s20   ;;  %s1103_s15 = smov %s816_s16 }
 0x1aa   : > { %p18_p4 = scmp.ge.s32.totalorder %s21_s20, 4   ;;  %s1104_s16 = smov %s820_s17 }
 0x1ab   : > { %s1105_s17 = smov %s923_s28  ;;  %s1106_s18 = smov %s828_s19 }
 0x1ac   : > { %s1107_s19 = smov %s1109_s23  ;;  %20 = sbr.rel (!%p18_p4) target bundleno = 6 (0x6), region = 95 }
 0x1b1   :  { %463 = vsyncpa [#allocation3], 1 }
 0x1b2   :  { %465 = vsyncpa [#allocation3 + $0x1], 1 }
 0x1b3   :  { %466 = vsyncpa [#allocation5], 1 }
 0x1b4   :  { %468 = vsyncpa [#allocation5 + $0x1], 1 }

</bundles_post_ra>
